<compile_context>
chip_gen: v6e
topology: v6e:2x2x1
jax: 0.10.0
libtpu: 0.0.40
codegen_flags: <defaults>
</compile_context>

<pallas_src>
import functools

import jax
import jax.numpy as jnp
from jax.experimental import pallas as pl
from jax.experimental.pallas import tpu as pltpu


def _tgg_kernel(lhs_ref, kp_ref, o_ref, *, group):
    """One row tile: (TR, DE) @ (DE, B*C) -> relu -> per-c-group softmax."""
    # Single MXU matmul: s[(a,h),(b,c)] == adp4[a,h,b,c] of the reference.
    s = jnp.dot(lhs_ref[...], kp_ref[...], preferred_element_type=jnp.float32)
    r = jnp.maximum(s, 0.0)                                    # relu (VPU)

    # Softmax over c within each group of `group` consecutive columns
    # (columns are ordered (b, c) with c fastest).  B is small, so this
    # unrolls into a handful of VPU/EUP ops on (TR, C) slices; the output
    # slab itself stays lane-dense (TR, B*C).
    bc = r.shape[-1]
    for start in range(0, bc, group):
        blk = r[:, start:start + group]                        # (TR, C)
        m = jnp.max(blk, axis=-1, keepdims=True)
        e = jnp.exp(blk - m)
        denom = jnp.sum(e, axis=-1, keepdims=True)
        sm = e * pl.reciprocal(denom, approx=True)             # EUP divide
        o_ref[:, start:start + group] = sm.astype(o_ref.dtype)


@jax.jit
def temporal_graph_generator_forward(params, t):
    nodetime = params["nodetime"]     # (N_t, D0)
    nodenum = params["nodenum"]       # (H,  D1)
    timevec1 = params["timevec1"]     # (B,  D2), B == num_steps
    timevec2 = params["timevec2"]     # (C,  D3), C == num_steps
    k = params["k"]                   # (D0, D1, D2, D3)

    A = t.shape[0]
    D0, D1, D2, D3 = k.shape
    H = nodenum.shape[0]
    B = timevec1.shape[0]
    C = timevec2.shape[0]
    DE = D0 * D1
    BC = B * C
    AH = A * H

    # ---- wrapper-side algebraic fold (tiny, t-independent part reusable) ---
    # W[(f,g),(b,c)] = timevec1[b,f] * timevec2[c,g]
    w = jnp.einsum("bf,cg->fgbc", timevec1, timevec2).reshape(D2 * D3, BC)
    # Kp[(d,e),(b,c)] = sum_{f,g} k[d,e,f,g] * timevec1[b,f] * timevec2[c,g]
    kp = k.reshape(DE, D2 * D3) @ w                            # (DE, B*C)
    # lhs[(a,h),(d,e)] = nodetime[t[a], d] * nodenum[h, e]     # (A*H, DE)
    lhs = jnp.einsum("ad,he->ahde", nodetime[t], nodenum).reshape(AH, DE)

    # Row tiling: a single "parallel" grid axis over (a,h) row tiles so large
    # A*H pipelines (double-buffered DMA) and shards across TensorCores on
    # v7x; 512-row f32 tiles stay well within the 32 MiB scoped VMEM default.
    row_tile = AH if AH <= 512 else 512
    grid = (pl.cdiv(AH, row_tile),)

    out2d = pl.pallas_call(
        functools.partial(_tgg_kernel, group=C),
        out_shape=jax.ShapeDtypeStruct((AH, BC), jnp.float32),
        grid=grid,
        in_specs=[
            pl.BlockSpec((row_tile, DE), lambda i: (i, 0)),
            pl.BlockSpec((DE, BC), lambda i: (0, 0)),
        ],
        out_specs=pl.BlockSpec((row_tile, BC), lambda i: (i, 0)),
        compiler_params=pltpu.CompilerParams(
            dimension_semantics=("parallel",)),
    )(lhs, kp)

    return out2d.reshape(A, H, B, C)


def _reference(params, t):
    nt = params["nodetime"][t]
    adp1 = jnp.einsum("ad,defg->aefg", nt, params["k"])
    adp2 = jnp.einsum("he,aefg->ahfg", params["nodenum"], adp1)
    adp3 = jnp.einsum("bf,ahfg->ahbg", params["timevec1"], adp2)
    adp4 = jnp.einsum("cg,ahbg->ahbc", params["timevec2"], adp3)
    return jax.nn.softmax(jax.nn.relu(adp4), axis=3)


def init_params(key, num_nodes, num_steps, N_t, temporal_dim):
    k0, k1, k2, k3, k4 = jax.random.split(key, 5)
    return {
        "nodetime": jax.random.normal(k0, (N_t, temporal_dim[0]), jnp.float32),
        "nodenum": jax.random.normal(k1, (num_nodes, temporal_dim[1]), jnp.float32),
        "timevec1": jax.random.normal(k2, (num_steps, temporal_dim[2]), jnp.float32),
        "timevec2": jax.random.normal(k3, (num_steps, temporal_dim[3]), jnp.float32),
        "k": jax.random.normal(
            k4,
            (temporal_dim[0], temporal_dim[1], temporal_dim[2], temporal_dim[3]),
            jnp.float32),
    }


if __name__ == "__main__":
    num_nodes = 8        # H
    num_steps = 8        # B == C
    N_t = 16
    temporal_dim = (8, 8, 8, 8)

    params = init_params(jax.random.PRNGKey(0), num_nodes, num_steps, N_t,
                         temporal_dim)
    t = jnp.array([3, 7], dtype=jnp.int32)   # batch of time indices, A = 2

    out = temporal_graph_generator_forward(params, t)
    out = jax.block_until_ready(out)

    ref = _reference(params, t)
    assert out.shape == (t.shape[0], num_nodes, num_steps, num_steps)
    # Tolerance loosened vs pure-f32 because the softmax divide now uses the
    # EUP approx reciprocal (relative error ~1e-4), per the perf review.
    assert jnp.allclose(out, ref, rtol=5e-3, atol=1e-3), (
        f"max abs diff {jnp.max(jnp.abs(out - ref))}")
    print("KERNEL_OK")
</pallas_src>

<mosaic_0001>
module attributes {stable_mosaic.version = 11 : i64} {
  func.func @_tgg_kernel(%arg0: i32, %arg1: memref<16x64xf32, #tpu.memory_space<vmem>>, %arg2: memref<64x64xf32, #tpu.memory_space<vmem>>, %arg3: memref<16x64xf32, #tpu.memory_space<vmem>>) attributes {dimension_semantics = [#tpu.dimension_semantics<parallel>], iteration_bounds = array<i64: 1>, scalar_prefetch = 0 : i64, scratch_operands = 0 : i64, tpu.core_type = #tpu.core_type<tc>, window_params = [{transform_indices = @transform_0, window_bounds = array<i64: 16, 64>}, {pipeline_mode = #tpu.pipeline_mode<synchronous>, transform_indices = @transform_1, window_bounds = array<i64: 64, 64>}, {transform_indices = @transform_2, window_bounds = array<i64: 16, 64>}]} {
    %c0 = arith.constant 0 : index
    %c0_0 = arith.constant 0 : index
    %0 = vector.load %arg1[%c0, %c0_0] : memref<16x64xf32, #tpu.memory_space<vmem>>, vector<16x64xf32>
    %c0_1 = arith.constant 0 : index
    %c0_2 = arith.constant 0 : index
    %1 = vector.load %arg2[%c0_1, %c0_2] : memref<64x64xf32, #tpu.memory_space<vmem>>, vector<64x64xf32>
    %cst = arith.constant dense<0.000000e+00> : vector<16x64xf32>
    %2 = tpu.matmul %0, %1, %cst {dimension_numbers = #tpu.dot_dimension_numbers<[1], [0], [0], [1], [0, 0, 1, 1], [], []>} : vector<16x64xf32>, vector<64x64xf32>, vector<16x64xf32> -> vector<16x64xf32>
    %cst_3 = arith.constant 0.000000e+00 : f32
    %3 = vector.broadcast %cst_3 : f32 to vector<16x64xf32>
    %4 = arith.maximumf %2, %3 : vector<16x64xf32>
    %5 = vector.extract_strided_slice %4 {offsets = [0, 0], sizes = [16, 8], strides = [1, 1]} : vector<16x64xf32> to vector<16x8xf32>
    %cst_4 = arith.constant dense<0xFF800000> : vector<16xf32>
    %6 = vector.multi_reduction <maximumf>, %5, %cst_4 [1] : vector<16x8xf32> to vector<16xf32>
    %7 = vector.shape_cast %6 : vector<16xf32> to vector<16x1xf32>
    %8 = vector.broadcast %7 : vector<16x1xf32> to vector<16x8xf32>
    %9 = arith.subf %5, %8 : vector<16x8xf32>
    %10 = math.exp %9 : vector<16x8xf32>
    %cst_5 = arith.constant dense<0.000000e+00> : vector<16xf32>
    %11 = vector.multi_reduction <add>, %10, %cst_5 [1] : vector<16x8xf32> to vector<16xf32>
    %12 = vector.shape_cast %11 : vector<16xf32> to vector<16x1xf32>
    %13 = tpu.reciprocal %12 {approx = true} : vector<16x1xf32> -> vector<16x1xf32>
    %14 = vector.broadcast %13 : vector<16x1xf32> to vector<16x8xf32>
    %15 = arith.mulf %10, %14 : vector<16x8xf32>
    %c0_6 = arith.constant 0 : index
    %c0_7 = arith.constant 0 : index
    %16 = vector.load %arg3[%c0_6, %c0_7] : memref<16x64xf32, #tpu.memory_space<vmem>>, vector<16x8xf32>
    tpu.vector_store %arg3[%c0_6, %c0_7], %15 {strides = array<i32>} : memref<16x64xf32, #tpu.memory_space<vmem>>, vector<16x8xf32>,
    %17 = vector.extract_strided_slice %4 {offsets = [0, 8], sizes = [16, 8], strides = [1, 1]} : vector<16x64xf32> to vector<16x8xf32>
    %cst_8 = arith.constant dense<0xFF800000> : vector<16xf32>
    %18 = vector.multi_reduction <maximumf>, %17, %cst_8 [1] : vector<16x8xf32> to vector<16xf32>
    %19 = vector.shape_cast %18 : vector<16xf32> to vector<16x1xf32>
    %20 = vector.broadcast %19 : vector<16x1xf32> to vector<16x8xf32>
    %21 = arith.subf %17, %20 : vector<16x8xf32>
    %22 = math.exp %21 : vector<16x8xf32>
    %cst_9 = arith.constant dense<0.000000e+00> : vector<16xf32>
    %23 = vector.multi_reduction <add>, %22, %cst_9 [1] : vector<16x8xf32> to vector<16xf32>
    %24 = vector.shape_cast %23 : vector<16xf32> to vector<16x1xf32>
    %25 = tpu.reciprocal %24 {approx = true} : vector<16x1xf32> -> vector<16x1xf32>
    %26 = vector.broadcast %25 : vector<16x1xf32> to vector<16x8xf32>
    %27 = arith.mulf %22, %26 : vector<16x8xf32>
    %c0_10 = arith.constant 0 : index
    %c8 = arith.constant 8 : index
    %28 = vector.load %arg3[%c0_10, %c8] : memref<16x64xf32, #tpu.memory_space<vmem>>, vector<16x8xf32>
    tpu.vector_store %arg3[%c0_10, %c8], %27 {strides = array<i32>} : memref<16x64xf32, #tpu.memory_space<vmem>>, vector<16x8xf32>,
    %29 = vector.extract_strided_slice %4 {offsets = [0, 16], sizes = [16, 8], strides = [1, 1]} : vector<16x64xf32> to vector<16x8xf32>
    %cst_11 = arith.constant dense<0xFF800000> : vector<16xf32>
    %30 = vector.multi_reduction <maximumf>, %29, %cst_11 [1] : vector<16x8xf32> to vector<16xf32>
    %31 = vector.shape_cast %30 : vector<16xf32> to vector<16x1xf32>
    %32 = vector.broadcast %31 : vector<16x1xf32> to vector<16x8xf32>
    %33 = arith.subf %29, %32 : vector<16x8xf32>
    %34 = math.exp %33 : vector<16x8xf32>
    %cst_12 = arith.constant dense<0.000000e+00> : vector<16xf32>
    %35 = vector.multi_reduction <add>, %34, %cst_12 [1] : vector<16x8xf32> to vector<16xf32>
    %36 = vector.shape_cast %35 : vector<16xf32> to vector<16x1xf32>
    %37 = tpu.reciprocal %36 {approx = true} : vector<16x1xf32> -> vector<16x1xf32>
    %38 = vector.broadcast %37 : vector<16x1xf32> to vector<16x8xf32>
    %39 = arith.mulf %34, %38 : vector<16x8xf32>
    %c0_13 = arith.constant 0 : index
    %c16 = arith.constant 16 : index
    %40 = vector.load %arg3[%c0_13, %c16] : memref<16x64xf32, #tpu.memory_space<vmem>>, vector<16x8xf32>
    tpu.vector_store %arg3[%c0_13, %c16], %39 {strides = array<i32>} : memref<16x64xf32, #tpu.memory_space<vmem>>, vector<16x8xf32>,
    %41 = vector.extract_strided_slice %4 {offsets = [0, 24], sizes = [16, 8], strides = [1, 1]} : vector<16x64xf32> to vector<16x8xf32>
    %cst_14 = arith.constant dense<0xFF800000> : vector<16xf32>
    %42 = vector.multi_reduction <maximumf>, %41, %cst_14 [1] : vector<16x8xf32> to vector<16xf32>
    %43 = vector.shape_cast %42 : vector<16xf32> to vector<16x1xf32>
    %44 = vector.broadcast %43 : vector<16x1xf32> to vector<16x8xf32>
    %45 = arith.subf %41, %44 : vector<16x8xf32>
    %46 = math.exp %45 : vector<16x8xf32>
    %cst_15 = arith.constant dense<0.000000e+00> : vector<16xf32>
    %47 = vector.multi_reduction <add>, %46, %cst_15 [1] : vector<16x8xf32> to vector<16xf32>
    %48 = vector.shape_cast %47 : vector<16xf32> to vector<16x1xf32>
    %49 = tpu.reciprocal %48 {approx = true} : vector<16x1xf32> -> vector<16x1xf32>
    %50 = vector.broadcast %49 : vector<16x1xf32> to vector<16x8xf32>
    %51 = arith.mulf %46, %50 : vector<16x8xf32>
    %c0_16 = arith.constant 0 : index
    %c24 = arith.constant 24 : index
    %52 = vector.load %arg3[%c0_16, %c24] : memref<16x64xf32, #tpu.memory_space<vmem>>, vector<16x8xf32>
    tpu.vector_store %arg3[%c0_16, %c24], %51 {strides = array<i32>} : memref<16x64xf32, #tpu.memory_space<vmem>>, vector<16x8xf32>,
    %53 = vector.extract_strided_slice %4 {offsets = [0, 32], sizes = [16, 8], strides = [1, 1]} : vector<16x64xf32> to vector<16x8xf32>
    %cst_17 = arith.constant dense<0xFF800000> : vector<16xf32>
    %54 = vector.multi_reduction <maximumf>, %53, %cst_17 [1] : vector<16x8xf32> to vector<16xf32>
    %55 = vector.shape_cast %54 : vector<16xf32> to vector<16x1xf32>
    %56 = vector.broadcast %55 : vector<16x1xf32> to vector<16x8xf32>
    %57 = arith.subf %53, %56 : vector<16x8xf32>
    %58 = math.exp %57 : vector<16x8xf32>
    %cst_18 = arith.constant dense<0.000000e+00> : vector<16xf32>
    %59 = vector.multi_reduction <add>, %58, %cst_18 [1] : vector<16x8xf32> to vector<16xf32>
    %60 = vector.shape_cast %59 : vector<16xf32> to vector<16x1xf32>
    %61 = tpu.reciprocal %60 {approx = true} : vector<16x1xf32> -> vector<16x1xf32>
    %62 = vector.broadcast %61 : vector<16x1xf32> to vector<16x8xf32>
    %63 = arith.mulf %58, %62 : vector<16x8xf32>
    %c0_19 = arith.constant 0 : index
    %c32 = arith.constant 32 : index
    %64 = vector.load %arg3[%c0_19, %c32] : memref<16x64xf32, #tpu.memory_space<vmem>>, vector<16x8xf32>
    tpu.vector_store %arg3[%c0_19, %c32], %63 {strides = array<i32>} : memref<16x64xf32, #tpu.memory_space<vmem>>, vector<16x8xf32>,
    %65 = vector.extract_strided_slice %4 {offsets = [0, 40], sizes = [16, 8], strides = [1, 1]} : vector<16x64xf32> to vector<16x8xf32>
    %cst_20 = arith.constant dense<0xFF800000> : vector<16xf32>
    %66 = vector.multi_reduction <maximumf>, %65, %cst_20 [1] : vector<16x8xf32> to vector<16xf32>
    %67 = vector.shape_cast %66 : vector<16xf32> to vector<16x1xf32>
    %68 = vector.broadcast %67 : vector<16x1xf32> to vector<16x8xf32>
    %69 = arith.subf %65, %68 : vector<16x8xf32>
    %70 = math.exp %69 : vector<16x8xf32>
    %cst_21 = arith.constant dense<0.000000e+00> : vector<16xf32>
    %71 = vector.multi_reduction <add>, %70, %cst_21 [1] : vector<16x8xf32> to vector<16xf32>
    %72 = vector.shape_cast %71 : vector<16xf32> to vector<16x1xf32>
    %73 = tpu.reciprocal %72 {approx = true} : vector<16x1xf32> -> vector<16x1xf32>
    %74 = vector.broadcast %73 : vector<16x1xf32> to vector<16x8xf32>
    %75 = arith.mulf %70, %74 : vector<16x8xf32>
    %c0_22 = arith.constant 0 : index
    %c40 = arith.constant 40 : index
    %76 = vector.load %arg3[%c0_22, %c40] : memref<16x64xf32, #tpu.memory_space<vmem>>, vector<16x8xf32>
    tpu.vector_store %arg3[%c0_22, %c40], %75 {strides = array<i32>} : memref<16x64xf32, #tpu.memory_space<vmem>>, vector<16x8xf32>,
    %77 = vector.extract_strided_slice %4 {offsets = [0, 48], sizes = [16, 8], strides = [1, 1]} : vector<16x64xf32> to vector<16x8xf32>
    %cst_23 = arith.constant dense<0xFF800000> : vector<16xf32>
    %78 = vector.multi_reduction <maximumf>, %77, %cst_23 [1] : vector<16x8xf32> to vector<16xf32>
    %79 = vector.shape_cast %78 : vector<16xf32> to vector<16x1xf32>
    %80 = vector.broadcast %79 : vector<16x1xf32> to vector<16x8xf32>
    %81 = arith.subf %77, %80 : vector<16x8xf32>
    %82 = math.exp %81 : vector<16x8xf32>
    %cst_24 = arith.constant dense<0.000000e+00> : vector<16xf32>
    %83 = vector.multi_reduction <add>, %82, %cst_24 [1] : vector<16x8xf32> to vector<16xf32>
    %84 = vector.shape_cast %83 : vector<16xf32> to vector<16x1xf32>
    %85 = tpu.reciprocal %84 {approx = true} : vector<16x1xf32> -> vector<16x1xf32>
    %86 = vector.broadcast %85 : vector<16x1xf32> to vector<16x8xf32>
    %87 = arith.mulf %82, %86 : vector<16x8xf32>
    %c0_25 = arith.constant 0 : index
    %c48 = arith.constant 48 : index
    %88 = vector.load %arg3[%c0_25, %c48] : memref<16x64xf32, #tpu.memory_space<vmem>>, vector<16x8xf32>
    tpu.vector_store %arg3[%c0_25, %c48], %87 {strides = array<i32>} : memref<16x64xf32, #tpu.memory_space<vmem>>, vector<16x8xf32>,
    %89 = vector.extract_strided_slice %4 {offsets = [0, 56], sizes = [16, 8], strides = [1, 1]} : vector<16x64xf32> to vector<16x8xf32>
    %cst_26 = arith.constant dense<0xFF800000> : vector<16xf32>
    %90 = vector.multi_reduction <maximumf>, %89, %cst_26 [1] : vector<16x8xf32> to vector<16xf32>
    %91 = vector.shape_cast %90 : vector<16xf32> to vector<16x1xf32>
    %92 = vector.broadcast %91 : vector<16x1xf32> to vector<16x8xf32>
    %93 = arith.subf %89, %92 : vector<16x8xf32>
    %94 = math.exp %93 : vector<16x8xf32>
    %cst_27 = arith.constant dense<0.000000e+00> : vector<16xf32>
    %95 = vector.multi_reduction <add>, %94, %cst_27 [1] : vector<16x8xf32> to vector<16xf32>
    %96 = vector.shape_cast %95 : vector<16xf32> to vector<16x1xf32>
    %97 = tpu.reciprocal %96 {approx = true} : vector<16x1xf32> -> vector<16x1xf32>
    %98 = vector.broadcast %97 : vector<16x1xf32> to vector<16x8xf32>
    %99 = arith.mulf %94, %98 : vector<16x8xf32>
    %c0_28 = arith.constant 0 : index
    %c56 = arith.constant 56 : index
    %100 = vector.load %arg3[%c0_28, %c56] : memref<16x64xf32, #tpu.memory_space<vmem>>, vector<16x8xf32>
    tpu.vector_store %arg3[%c0_28, %c56], %99 {strides = array<i32>} : memref<16x64xf32, #tpu.memory_space<vmem>>, vector<16x8xf32>,
    return
  }
  func.func @transform_0(%arg0: i32) -> (i32, i32) {
    %c0_i32 = arith.constant 0 : i32
    %c0_i32_0 = arith.constant 0 : i32
    return %arg0, %c0_i32 : i32, i32
  }
  func.func @transform_1(%arg0: i32) -> (i32, i32) {
    %c0_i32 = arith.constant 0 : i32
    %c0_i32_0 = arith.constant 0 : i32
    %c0_i32_1 = arith.constant 0 : i32
    return %c0_i32, %c0_i32_0 : i32, i32
  }
  func.func @transform_2(%arg0: i32) -> (i32, i32) {
    %c0_i32 = arith.constant 0 : i32
    %c0_i32_0 = arith.constant 0 : i32
    return %arg0, %c0_i32 : i32, i32
  }
}

</mosaic_0001>

<bundles_post_ra>
// kernel: temporal_graph_generator_forward.1
= control target key start
LH: loop header
LB: loop body
LE: loop exit
PB: predicated region body
PF: predicated region fallthrough
CT: control target
= control target key end

     0   :  { %vm21_vm0 = vcmask 523264   ;;  %vm130_vm1 = vcmask 130112   ;;  %vm105_vm2 = vcmask 64512   ;;  %vm163_vm3 = vcmask 195712   ;;  %s469_s29 = smov 104   ;;  %s470_s30 = smov 96   ;;  %s721_s1 = inlined_call_operand.vmem [shape: f32[64,64], index: 1, kind: input, shape index: {}]   ;;  %s722_s0 = inlined_call_operand.vmem [shape: f32[16,64], index: 0, kind: input, shape index: {}]   ;;  %s723_s2 = inlined_call_operand.vmem [shape: f32[16,64], index: 2, kind: output, shape index: {}]  }
   0x1   :  { %v20_v0 = vld [vmem:[%s721_s1 + $0x38] sm:$0xff]  ;;  %v19_v1 = vld [vmem:[%s721_s1 + $0x30] sm:$0xff]  ;;  %v18_v2 = vld [vmem:[%s721_s1 + $0x28] sm:$0xff]  ;;  %vm196_vm4 = vcmask 261312   ;;  %vm229_vm5 = vcmask 326912   ;;  %vm262_vm6 = vcmask 392512  }
   0x2   :  { %377 = vmatprep.subr.mxu0 %v20_v0  ;;  %v11_v3 = vld [vmem:[%s722_s0] sm:$0xff]  ;;  %v16_v5 = vld [vmem:[%s721_s1 + $0x18] sm:$0xff]  ;;  %v15_v6 = vld [vmem:[%s721_s1 + $0x10] sm:$0xff]  ;;  %vm295_vm7 = vcmask 458112   ;;  %vm328_vm8 = vcmask 523712   ;;  %s471_s3 = smov 88  }
   0x3   :  { %378 = vmatpush3.msra.mxu0 %v20_v0  ;;  %393 = vmatprep.mubr.msk.f32.mxu0 %vm21_vm0, %v11_v3  ;;  %v17_v4 = vld [vmem:[%s721_s1 + $0x20] sm:$0xff]  ;;  %v14_v7 = vld [vmem:[%s721_s1 + $0x8] sm:$0xff]  ;;  %s472_s4 = smov 80   ;;  %s473_s5 = smov 72  }
   0x4   :  { %379 = vmatprep.subr.mxu0 %v19_v1  ;;  %v13_v8 = vld [vmem:[%s721_s1] sm:$0xff]  ;;  %v12_v9 = vld [vmem:[%s722_s0 + $0x8] sm:$0xff]  ;;  %s467_s0 = smov 120   ;;  %s468_s1 = smov 112  }
   0x5   :  { %380 = vmatpush3.msra.mxu0 %v19_v1 }
   0x6   :  { %381 = vmatprep.subr.mxu0 %v18_v2 }
   0x7   :  { %382 = vmatpush3.msra.mxu0 %v18_v2 }
   0x8   :  { %383 = vmatprep.subr.mxu0 %v17_v4 }
   0x9   :  { %384 = vmatpush3.msra.mxu0 %v17_v4 }
   0xa   :  { %385 = vmatprep.subr.mxu0 %v16_v5 }
   0xb   :  { %386 = vmatpush3.msra.mxu0 %v16_v5 }
   0xc   :  { %387 = vmatprep.subr.mxu0 %v15_v6 }
   0xd   :  { %388 = vmatpush3.msra.mxu0 %v15_v6 }
   0xe   :  { %389 = vmatprep.subr.mxu0 %v14_v7 }
   0xf   :  { %390 = vmatpush3.msra.mxu0 %v14_v7 }
  0x10   :  { %391 = vmatprep.subr.mxu0 %v13_v8 }
  0x11   :  { %392 = vmatpush3.msra.mxu0 %v13_v8 }
  0x12   :  { %394 = vmatmul.mubr.msk.f32.vlgmr.msra.gmra.mxu0 %vm21_vm0, %v12_v9 }
  0xd2   :  { %v395_v10 = vpop.f32.mrf.mxu0 }
  0xd3   :  { %v521_v11 = vmax.f32 %v395_v10, 0.0 }
  0xd4   :  { %v94_v12 = vpop.f32.mrf.mxu0 }
  0xd5   :  { %v523_v13 = vmax.f32 %v94_v12, 0.0  ;;  %v134_v14 = vsel %vm130_vm1, %v521_v11, -inf  ;;  %v109_v15 = vsel %vm105_vm2, %v521_v11, -inf  ;;  %v167_v16 = vsel %vm163_vm3, %v521_v11, -inf }
  0xd6   :  { %135 = vmax.xlane.f32.xlu1 %v134_v14  ;;  %110 = vmax.xlane.f32.xlu0 %v109_v15  ;;  %v200_v18 = vsel %vm196_vm4, %v521_v11, -inf  ;;  %v233_v20 = vsel %vm229_vm5, %v521_v11, -inf  ;;  %v266_v25 = vsel %vm262_vm6, %v521_v11, -inf  ;;  %v299_v26 = vsel %vm295_vm7, %v521_v11, -inf }
  0xd7   :  { %v106_v17 = vsel %vm105_vm2, %v523_v13, -inf  ;;  %v131_v19 = vsel %vm130_vm1, %v523_v13, -inf  ;;  %v263_v21 = vsel %vm262_vm6, %v523_v13, -inf  ;;  %v164_v22 = vsel %vm163_vm3, %v523_v13, -inf }
  0xd8   :  { %v197_v23 = vsel %vm196_vm4, %v523_v13, -inf  ;;  %v230_v24 = vsel %vm229_vm5, %v523_v13, -inf  ;;  %v296_v27 = vsel %vm295_vm7, %v523_v13, -inf  ;;  %v329_v28 = vsel %vm328_vm8, %v523_v13, -inf }
  0xd9   :  { %v332_v29 = vsel %vm328_vm8, %v521_v11, -inf }
  0xda   :  { %168 = vmax.xlane.f32.xlu1 %v167_v16  ;;  %107 = vmax.xlane.f32.xlu0 %v106_v17 }
  0xde   :  { %201 = vmax.xlane.f32.xlu1 %v200_v18  ;;  %132 = vmax.xlane.f32.xlu0 %v131_v19 }
  0xe2   :  { %234 = vmax.xlane.f32.xlu1 %v233_v20  ;;  %264 = vmax.xlane.f32.xlu0 %v263_v21 }
  0xe6   :  { %165 = vmax.xlane.f32.xlu1 %v164_v22 }
  0xea   :  { %198 = vmax.xlane.f32.xlu1 %v197_v23 }
  0xee   :  { %231 = vmax.xlane.f32.xlu1 %v230_v24 }
  0xf2   :  { %267 = vmax.xlane.f32.xlu1 %v266_v25 }
  0xf6   :  { %300 = vmax.xlane.f32.xlu1 %v299_v26 }
  0xfa   :  { %297 = vmax.xlane.f32.xlu1 %v296_v27 }
  0xfe   :  { %330 = vmax.xlane.f32.xlu1 %v329_v28 }
 0x102   :  { %333 = vmax.xlane.f32.xlu1 %v332_v29 }
 0x15f   :  { %v136_v30 = vpop.xlane.xlu1 %135  ;;  %v111_v44 = vpop.xlane.xlu0 %110 }
 0x160   :  { %v138_v31 = vsub.f32 %v521_v11, %v136_v30  ;;  %v113_v16 = vsub.f32 %v521_v11, %v111_v44 }
 0x162   :  { %v141_v32 = vmul.f32 1.442695, %v138_v31  ;;  %v116_v21 = vmul.f32 1.442695, %v113_v16 }
 0x163   :  { %v169_v33 = vpop.xlane.xlu1 %168  ;;  %v108_v47 = vpop.xlane.xlu0 %107 }
 0x164   :  { %403 = vpow2.f32 %v141_v32  ;;  %v171_v34 = vsub.f32 %v521_v11, %v169_v33  ;;  %v112_v22 = vsub.f32 %v523_v13, %v108_v47 }
 0x166   :  { %v174_v35 = vmul.f32 1.442695, %v171_v34  ;;  %v114_v25 = vmul.f32 1.442695, %v112_v22 }
 0x167   :  { %v202_v36 = vpop.xlane.xlu1 %201  ;;  %v133_v53 = vpop.xlane.xlu0 %132 }
 0x168   :  { %405 = vpow2.f32 %v174_v35  ;;  %v204_v37 = vsub.f32 %v521_v11, %v202_v36  ;;  %v137_v56 = vsub.f32 %v523_v13, %v133_v53 }
 0x16a   :  { %v207_v38 = vmul.f32 1.442695, %v204_v37  ;;  %v139_v59 = vmul.f32 1.442695, %v137_v56 }
 0x16b   :  { %v235_v39 = vpop.xlane.xlu1 %234  ;;  %v265_v2 = vpop.xlane.xlu0 %264 }
 0x16c   :  { %407 = vpow2.f32 %v207_v38  ;;  %v237_v40 = vsub.f32 %v521_v11, %v235_v39  ;;  %v269_v4 = vsub.f32 %v523_v13, %v265_v2 }
 0x16e   :  { %v240_v41 = vmul.f32 1.442695, %v237_v40  ;;  %v271_v8 = vmul.f32 1.442695, %v269_v4 }
 0x16f   :  { %v166_v42 = vpop.xlane.xlu1 %165 }
 0x170   :  { %409 = vpow2.f32 %v240_v41  ;;  %v170_v60 = vsub.f32 %v523_v13, %v166_v42 }
 0x171   :  { %v561_v43 = vpop.eup %403 }
 0x172   :  { %147 = vrot.lane.b32.xlu1 %v561_v43, %s467_s0  ;;  %v172_v61 = vmul.f32 1.442695, %v170_v60 }
 0x173   :  { %v199_v45 = vpop.xlane.xlu1 %198 }
 0x174   :  { %v203_v62 = vsub.f32 %v523_v13, %v199_v45 }
 0x175   :  { %v565_v46 = vpop.eup %405 }
 0x176   :  { %180 = vrot.lane.b32.xlu1 %v565_v46, %s468_s1  ;;  %v205_v63 = vmul.f32 1.442695, %v203_v62 }
 0x177   :  { %v232_v48 = vpop.xlane.xlu1 %231 }
 0x178   :  { %v236_v0 = vsub.f32 %v523_v13, %v232_v48 }
 0x179   :  { %v569_v49 = vpop.eup %407 }
 0x17a   :  { %213 = vrot.lane.b32.xlu0 %v569_v49, %s469_s29  ;;  %v238_v5 = vmul.f32 1.442695, %v236_v0 }
 0x17b   :  { %v268_v50 = vpop.xlane.xlu1 %267 }
 0x17c   :  { %v270_v51 = vsub.f32 %v521_v11, %v268_v50 }
 0x17d   :  { %v574_v52 = vpop.eup %409 }
 0x17e   :  { %v273_v54 = vmul.f32 1.442695, %v270_v51  ;;  %246 = vrot.lane.b32.xlu0 %v574_v52, %s470_s30 }
 0x17f   :  { %v301_v55 = vpop.xlane.xlu1 %300 }
 0x180   :  { %411 = vpow2.f32 %v273_v54  ;;  %v303_v57 = vsub.f32 %v521_v11, %v301_v55 }
 0x182   :  { %v306_v58 = vmul.f32 1.442695, %v303_v57 }
 0x183   :  { %v298_v3 = vpop.xlane.xlu1 %297 }
 0x184   :  { %413 = vpow2.f32 %v306_v58  ;;  %v302_v9 = vsub.f32 %v523_v13, %v298_v3 }
 0x185   :  { %415 = vpow2.f32 %v139_v59 }
 0x186   :  { %417 = vpow2.f32 %v172_v61  ;;  %v304_v12 = vmul.f32 1.442695, %v302_v9 }
 0x187   :  { %419 = vpow2.f32 %v205_v63  ;;  %v331_v7 = vpop.xlane.xlu1 %330 }
 0x188   :  { %421 = vpow2.f32 %v238_v5  ;;  %v335_v14 = vsub.f32 %v523_v13, %v331_v7 }
 0x189   :  { %423 = vpow2.f32 %v271_v8 }
 0x18a   :  { %425 = vpow2.f32 %v304_v12  ;;  %v337_v18 = vmul.f32 1.442695, %v335_v14 }
 0x18b   :  { %v334_v17 = vpop.xlane.xlu1 %333 }
 0x18c   :  { %v336_v19 = vsub.f32 %v521_v11, %v334_v17  ;;  %427 = vpow2.f32 %v337_v18 }
 0x18d   :  { %v583_v1 = vpop.eup %411  ;;  %429 = vpow2.f32 %v116_v21 }
 0x18e   :  { %279 = vrot.lane.b32.xlu1 %v583_v1, %s471_s3  ;;  %v339_v23 = vmul.f32 1.442695, %v336_v19 }
 0x190   :  { %431 = vpow2.f32 %v339_v23 }
 0x191   :  { %v588_v6 = vpop.eup %413  ;;  %433 = vpow2.f32 %v114_v25 }
 0x192   :  { %312 = vrot.lane.b32.xlu0 %v588_v6, %s472_s4  ;;  %v593_v10 = vpop.eup %415 }
 0x193   :  { %v598_v15 = vpop.eup %417 }
 0x194   :  { %v604_v20 = vpop.eup %419 }
 0x195   :  { %v609_v24 = vpop.eup %421 }
 0x196   :  { %145 = vrot.lane.b32.xlu0 %v593_v10, %s467_s0  ;;  %v613_v26 = vpop.eup %423 }
 0x197   :  { %v617_v11 = vpop.eup %425 }
 0x199   :  { %v621_v13 = vpop.eup %427 }
 0x19a   :  { %178 = vrot.lane.b32.xlu0 %v598_v15, %s468_s1  ;;  %v430_v27 = vpop.eup %429 }
 0x19b   :  { %v121_v29 = vsel %vm105_vm2, %v430_v27, 0.0 }
 0x19d   :  { %v624_v28 = vpop.eup %431 }
 0x19e   :  { %211 = vrot.lane.b32.xlu0 %v604_v20, %s469_s29  ;;  %v434_v30 = vpop.eup %433 }
 0x19f   :  { %v118_v31 = vsel %vm105_vm2, %v434_v30, 0.0 }
 0x1a2   :  { %244 = vrot.lane.b32.xlu0 %v609_v24, %s470_s30 }
 0x1a6   :  { %277 = vrot.lane.b32.xlu0 %v613_v26, %s471_s3 }
 0x1aa   :  { %310 = vrot.lane.b32.xlu0 %v617_v11, %s472_s4 }
 0x1ae   :  { %343 = vrot.lane.b32.xlu0 %v621_v13, %s473_s5 }
 0x1b2   :  { %122 = vadd.xlane.f32.xlu1 %v121_v29  ;;  %345 = vrot.lane.b32.xlu0 %v624_v28, %s473_s5 }
 0x1b6   :  { %119 = vadd.xlane.f32.xlu1 %v118_v31 }
 0x1e4   :  { %v148_v32 = vpop.permute.xlu1 %147 }
 0x1e5   :  { %v154_v33 = vsel %vm105_vm2, %v148_v32, 0.0 }
 0x1e6   :  { %155 = vadd.xlane.f32.xlu0 %v154_v33 }
 0x1e8   :  { %v181_v34 = vpop.permute.xlu1 %180 }
 0x1e9   :  { %v187_v35 = vsel %vm105_vm2, %v181_v34, 0.0 }
 0x1ea   :  { %188 = vadd.xlane.f32.xlu1 %v187_v35 }
 0x1ec   :  { %v214_v36 = vpop.permute.xlu0 %213 }
 0x1ed   :  { %v220_v37 = vsel %vm105_vm2, %v214_v36, 0.0 }
 0x1ee   :  { %221 = vadd.xlane.f32.xlu0 %v220_v37 }
 0x1f0   :  { %v247_v38 = vpop.permute.xlu0 %246 }
 0x1f1   :  { %v253_v39 = vsel %vm105_vm2, %v247_v38, 0.0 }
 0x1f2   :  { %254 = vadd.xlane.f32.xlu1 %v253_v39 }
 0x200   :  { %v280_v40 = vpop.permute.xlu1 %279 }
 0x201   :  { %v286_v41 = vsel %vm105_vm2, %v280_v40, 0.0 }
 0x202   :  { %287 = vadd.xlane.f32.xlu1 %v286_v41 }
 0x204   :  { %v313_v42 = vpop.permute.xlu0 %312 }
 0x205   :  { %v319_v51 = vsel %vm105_vm2, %v313_v42, 0.0 }
 0x208   :  { %v146_v44 = vpop.permute.xlu0 %145 }
 0x209   :  { %v151_v45 = vsel %vm105_vm2, %v146_v44, 0.0 }
 0x20a   :  { %152 = vadd.xlane.f32.xlu0 %v151_v45 }
 0x20c   :  { %v179_v47 = vpop.permute.xlu0 %178 }
 0x20d   :  { %v184_v48 = vsel %vm105_vm2, %v179_v47, 0.0 }
 0x20e   :  { %185 = vadd.xlane.f32.xlu1 %v184_v48 }
 0x210   :  { %v212_v50 = vpop.permute.xlu0 %211 }
 0x211   :  { %v217_v53 = vsel %vm105_vm2, %v212_v50, 0.0 }
 0x212   :  { %320 = vadd.xlane.f32.xlu1 %v319_v51  ;;  %218 = vadd.xlane.f32.xlu0 %v217_v53 }
 0x214   :  { %v245_v54 = vpop.permute.xlu0 %244 }
 0x215   :  { %v250_v55 = vsel %vm105_vm2, %v245_v54, 0.0 }
 0x216   :  { %251 = vadd.xlane.f32.xlu0 %v250_v55 }
 0x218   :  { %v278_v56 = vpop.permute.xlu0 %277 }
 0x219   :  { %v283_v57 = vsel %vm105_vm2, %v278_v56, 0.0 }
 0x21a   :  { %284 = vadd.xlane.f32.xlu0 %v283_v57 }
 0x21c   :  { %v311_v58 = vpop.permute.xlu0 %310 }
 0x21d   :  { %v316_v59 = vsel %vm105_vm2, %v311_v58, 0.0 }
 0x21e   :  { %317 = vadd.xlane.f32.xlu0 %v316_v59 }
 0x220   :  { %v344_v60 = vpop.permute.xlu0 %343 }
 0x221   :  { %v349_v61 = vsel %vm105_vm2, %v344_v60, 0.0 }
 0x222   :  { %350 = vadd.xlane.f32.xlu0 %v349_v61 }
 0x224   :  { %v346_v62 = vpop.permute.xlu0 %345 }
 0x225   :  { %v352_v63 = vsel %vm105_vm2, %v346_v62, 0.0 }
 0x226   :  { %353 = vadd.xlane.f32.xlu1 %v352_v63 }
 0x23b   :  { %v123_v0 = vpop.xlane.xlu1 %122 }
 0x23c   :  { %435 = vrcp.f32 %v123_v0 }
 0x23f   :  { %v120_v2 = vpop.xlane.xlu1 %119 }
 0x240   :  { %437 = vrcp.f32 %v120_v2 }
 0x249   :  { %v436_v3 = vpop.eup %435 }
 0x24a   :  { %v127_v4 = vmul.f32 %v436_v3, %v430_v27 }
 0x24c   :  { %129 = vst.msk [vmem:[%s723_s2 + $0x8] sm:$0xff] %vm105_vm2, %v127_v4 }
 0x24d   :  { %v438_v5 = vpop.eup %437 }
 0x24e   :  { %v126_v7 = vmul.f32 %v438_v5, %v434_v30 }
 0x250   :  { %128 = vst.msk [vmem:[%s723_s2] sm:$0xff] %vm105_vm2, %v126_v7 }
 0x26f   :  { %v156_v8 = vpop.xlane.xlu0 %155 }
 0x270   :  { %439 = vrcp.f32 %v156_v8 }
 0x273   :  { %v189_v9 = vpop.xlane.xlu1 %188 }
 0x274   :  { %441 = vrcp.f32 %v189_v9 }
 0x277   :  { %v222_v12 = vpop.xlane.xlu0 %221 }
 0x278   :  { %443 = vrcp.f32 %v222_v12 }
 0x27b   :  { %v255_v14 = vpop.xlane.xlu1 %254 }
 0x27c   :  { %445 = vrcp.f32 %v255_v14 }
 0x27d   :  { %v440_v16 = vpop.eup %439 }
 0x27e   :  { %v160_v17 = vmul.f32 %v440_v16, %v561_v43 }
 0x280   :  { %162 = vst.msk [vmem:[%s723_s2 + $0x8] sm:$0xff] %vm130_vm1, %v160_v17 }
 0x281   :  { %v442_v18 = vpop.eup %441 }
 0x282   :  { %v193_v19 = vmul.f32 %v442_v18, %v565_v46 }
 0x284   :  { %195 = vst.msk [vmem:[%s723_s2 + $0x8] sm:$0xff] %vm163_vm3, %v193_v19 }
 0x285   :  { %v444_v21 = vpop.eup %443 }
 0x286   :  { %v226_v22 = vmul.f32 %v444_v21, %v569_v49 }
 0x288   :  { %228 = vst.msk [vmem:[%s723_s2 + $0x8] sm:$0xff] %vm196_vm4, %v226_v22 }
 0x289   :  { %v446_v43 = vpop.eup %445 }
 0x28a   :  { %v259_v23 = vmul.f32 %v446_v43, %v574_v52 }
 0x28b   :  { %v288_v25 = vpop.xlane.xlu1 %287 }
 0x28c   :  { %261 = vst.msk [vmem:[%s723_s2 + $0x8] sm:$0xff] %vm229_vm5, %v259_v23  ;;  %447 = vrcp.f32 %v288_v25 }
 0x293   :  { %v153_v46 = vpop.xlane.xlu0 %152 }
 0x294   :  { %449 = vrcp.f32 %v153_v46 }
 0x297   :  { %v186_v27 = vpop.xlane.xlu1 %185 }
 0x298   :  { %451 = vrcp.f32 %v186_v27 }
 0x299   :  { %v448_v49 = vpop.eup %447 }
 0x29a   :  { %v292_v29 = vmul.f32 %v448_v49, %v583_v1 }
 0x29b   :  { %v321_v30 = vpop.xlane.xlu1 %320  ;;  %v219_v31 = vpop.xlane.xlu0 %218 }
 0x29c   :  { %294 = vst.msk [vmem:[%s723_s2 + $0x8] sm:$0xff] %vm262_vm6, %v292_v29  ;;  %453 = vrcp.f32 %v321_v30 }
 0x29d   :  { %455 = vrcp.f32 %v219_v31 }
 0x29f   :  { %v252_v52 = vpop.xlane.xlu0 %251 }
 0x2a0   :  { %457 = vrcp.f32 %v252_v52 }
 0x2a1   :  { %v450_v32 = vpop.eup %449 }
 0x2a2   :  { %v159_v33 = vmul.f32 %v450_v32, %v593_v10 }
 0x2a3   :  { %v285_v34 = vpop.xlane.xlu0 %284 }
 0x2a4   :  { %161 = vst.msk [vmem:[%s723_s2] sm:$0xff] %vm130_vm1, %v159_v33  ;;  %459 = vrcp.f32 %v285_v34 }
 0x2a5   :  { %v452_v1 = vpop.eup %451 }
 0x2a6   :  { %v192_v35 = vmul.f32 %v452_v1, %v598_v15 }
 0x2a7   :  { %v318_v36 = vpop.xlane.xlu0 %317 }
 0x2a8   :  { %194 = vst.msk [vmem:[%s723_s2] sm:$0xff] %vm163_vm3, %v192_v35  ;;  %461 = vrcp.f32 %v318_v36 }
 0x2a9   :  { %v454_v37 = vpop.eup %453 }
 0x2aa   :  { %v456_v38 = vpop.eup %455  ;;  %v325_v10 = vmul.f32 %v454_v37, %v588_v6 }
 0x2ab   :  { %v225_v39 = vmul.f32 %v456_v38, %v604_v20  ;;  %v351_v40 = vpop.xlane.xlu0 %350 }
 0x2ac   :  { %327 = vst.msk [vmem:[%s723_s2 + $0x8] sm:$0xff] %vm295_vm7, %v325_v10  ;;  %463 = vrcp.f32 %v351_v40 }
 0x2ad   :  { %v458_v15 = vpop.eup %457  ;;  %227 = vst.msk [vmem:[%s723_s2] sm:$0xff] %vm196_vm4, %v225_v39 }
 0x2ae   :  { %v258_v41 = vmul.f32 %v458_v15, %v609_v24 }
 0x2af   :  { %v354_v42 = vpop.xlane.xlu1 %353 }
 0x2b0   :  { %260 = vst.msk [vmem:[%s723_s2] sm:$0xff] %vm229_vm5, %v258_v41  ;;  %465 = vrcp.f32 %v354_v42 }
 0x2b1   :  { %v460_v6 = vpop.eup %459 }
 0x2b2   :  { %v291_v20 = vmul.f32 %v460_v6, %v613_v26 }
 0x2b4   :  { %293 = vst.msk [vmem:[%s723_s2] sm:$0xff] %vm262_vm6, %v291_v20 }
 0x2b5   :  { %v462_v44 = vpop.eup %461 }
 0x2b6   :  { %v324_v45 = vmul.f32 %v462_v44, %v617_v11 }
 0x2b8   :  { %326 = vst.msk [vmem:[%s723_s2] sm:$0xff] %vm295_vm7, %v324_v45 }
 0x2b9   :  { %v464_v24 = vpop.eup %463 }
 0x2ba   :  { %v357_v47 = vmul.f32 %v464_v24, %v621_v13 }
 0x2bc   :  { %359 = vst.msk [vmem:[%s723_s2] sm:$0xff] %vm328_vm8, %v357_v47 }
 0x2bd   :  { %v466_v26 = vpop.eup %465 }
 0x2be   :  { %v358_v48 = vmul.f32 %v466_v26, %v624_v28 }
 0x2c0   :  { %360 = vst.msk [vmem:[%s723_s2 + $0x8] sm:$0xff] %vm328_vm8, %v358_v48 }

</bundles_post_ra>
